<compile_context>
chip_gen: v7x
topology: tpu7x:2x2x1
jax: 0.10.0
libtpu: 0.0.40
codegen_flags: <defaults>
</compile_context>

<pallas_src>
import functools

import jax
import jax.numpy as jnp
from jax.experimental import pallas as pl
from jax.experimental.pallas import tpu as pltpu

_LANE = 128
_SUBLANE = 8


def _round_up(n, m):
    return ((n + m - 1) // m) * m


def _ffrelunet_kernel(*refs, n_layers, stoch, log_var, output_dim, compute_dtype):
    """refs = (x, [w, b] * n_layers, out)."""
    h = refs[0][...]                              # [TB, in_dim], compute_dtype
    idx = 1

    # Hidden Linear + ReLU layers: matmul in compute_dtype (bf16 fast path) with
    # f32 accumulation; bias add / ReLU in f32, cast back for the next MXU pass.
    for _ in range(n_layers - 1):
        w_ref, b_ref = refs[idx], refs[idx + 1]
        idx += 2
        z = jnp.dot(h, w_ref[...], preferred_element_type=jnp.float32) + b_ref[...]
        h = jnp.maximum(z, 0.0).astype(compute_dtype)

    # Fused final layer: one matmul holds both heads (mean columns [0, output_dim),
    # variance columns [output_dim, 2*output_dim) when stoch); exp/square is applied
    # only to the variance columns via a lane mask.  Padded lanes carry zeros.
    w_ref, b_ref, out_ref = refs[idx], refs[idx + 1], refs[idx + 2]
    z = jnp.dot(h, w_ref[...], preferred_element_type=jnp.float32) + b_ref[...]
    if stoch:
        col = jax.lax.broadcasted_iota(jnp.int32, z.shape, 1)
        is_var = jnp.logical_and(col >= output_dim, col < 2 * output_dim)
        var = jnp.exp(z) if log_var else z * z
        z = jnp.where(is_var, var, z)
    # TODO(synk): normalize=True (F.normalize) and add_sigmoid=True ctor options of
    # the torch module are not enabled by its default args; omitted here.
    out_ref[...] = z.astype(out_ref.dtype)


def _pad_linear(w, b, in_rows, out_cols, compute_dtype):
    """Zero-pad a [in, out] weight to [in_rows, out_cols]; bias to [1, out_cols] (f32)."""
    wi, wo = w.shape
    wp = jnp.zeros((in_rows, out_cols), jnp.float32).at[:wi, :wo].set(w)
    bp = jnp.zeros((1, out_cols), jnp.float32).at[:, :wo].set(b.reshape(1, -1))
    return wp.astype(compute_dtype), bp            # bias stays f32 (added to f32 acc)


def ffrelunet_forward(x, weights, biases, *, stoch=True, log_var=True,
                      batch_tile=512, compute_dtype=jnp.bfloat16, out_dtype=None):
    """FFReLUNet forward pass as a single gridded Pallas call.

    Args:
      x:       [batch, shape[0]] float32
      weights: list of [shape[i], shape[i+1]] float32 (transposed vs. torch layout)
      biases:  list of [1, shape[i+1]] float32
    Returns:
      (means, variances), each [batch, shape[-1] // 2], if stoch; else means.
    """
    n_layers = len(weights)
    batch, in_dim = x.shape
    final_dim = weights[-1].shape[1]
    if stoch:
        assert final_dim % 2 == 0, "stoch=True requires an even final-layer width"
        output_dim = final_dim // 2
    else:
        output_dim = final_dim
    if out_dtype is None:
        out_dtype = compute_dtype

    # ---- lane-dense padding of parameters ----
    # First layer keeps its true in_dim rows (x is not feature-padded); later
    # layers' rows are padded to the previous layer's padded width; every layer's
    # output width is padded to a multiple of 128 so stores are unmasked vst.
    param_args = []
    prev_cols = in_dim
    for w, b in zip(weights, biases):
        out_cols = _round_up(w.shape[1], _LANE)
        param_args.extend(_pad_linear(w, b, prev_cols, out_cols, compute_dtype))
        prev_cols = out_cols
    out_pad = prev_cols                            # padded width of the final layer

    # ---- batch tiling: pad batch to a multiple of the tile, grid over tiles ----
    tb = min(batch_tile, _round_up(batch, _SUBLANE))
    batch_pad = _round_up(batch, tb)
    if batch_pad == batch:
        x_p = x.astype(compute_dtype)
    else:
        x_p = (jnp.zeros((batch_pad, in_dim), x.dtype)
               .at[:batch, :].set(x).astype(compute_dtype))
    grid = (batch_pad // tb,)

    # x / output stream through the pipeline; params use a constant block index so
    # they are fetched into VMEM once and stay resident for every grid step.
    in_specs = [pl.BlockSpec((tb, in_dim), lambda i: (i, 0))]
    in_specs += [pl.BlockSpec(a.shape, lambda i: (0, 0)) for a in param_args]
    out_specs = pl.BlockSpec((tb, out_pad), lambda i: (i, 0))
    out_shape = jax.ShapeDtypeStruct((batch_pad, out_pad), out_dtype)

    # ---- explicit VMEM budget: resident params counted once, double-buffered
    # ---- x/out tiles, healthy floor, cap under v7x's 64 MiB physical VMEM ----
    out_itemsize = jnp.dtype(out_dtype).itemsize
    param_bytes = sum(int(a.size) * a.dtype.itemsize for a in param_args)
    stream_bytes = tb * in_dim * x_p.dtype.itemsize + tb * out_pad * out_itemsize
    vmem_limit = int(min(max(param_bytes + 4 * stream_bytes + (4 << 20), 16 << 20),
                         48 << 20))
    # TODO(synk): weight-streaming fallback (extra K/N "arbitrary" grid axis) for
    # hidden widths whose resident params would not fit v7x's 64 MiB VMEM.

    # ---- advisory cost estimate so XLA schedules around the call sensibly ----
    flops = 2 * batch_pad * sum(int(w.shape[0]) * int(w.shape[1])
                                for w in param_args[0::2])
    transcendentals = batch_pad * out_pad if (stoch and log_var) else 0
    bytes_accessed = (int(x_p.size) * x_p.dtype.itemsize + param_bytes
                      + batch_pad * out_pad * out_itemsize)

    kernel = functools.partial(_ffrelunet_kernel, n_layers=n_layers, stoch=stoch,
                               log_var=log_var, output_dim=output_dim,
                               compute_dtype=compute_dtype)

    out = pl.pallas_call(
        kernel,
        grid=grid,
        in_specs=in_specs,
        out_specs=out_specs,
        out_shape=out_shape,
        compiler_params=pltpu.CompilerParams(
            dimension_semantics=("parallel",),
            vmem_limit_bytes=vmem_limit),
        cost_estimate=pl.CostEstimate(flops=int(flops),
                                      transcendentals=int(transcendentals),
                                      bytes_accessed=int(bytes_accessed)),
    )(x_p, *param_args)

    means = out[:batch, :output_dim]
    if stoch:
        variances = out[:batch, output_dim:final_dim]
        return means, variances
    return means


def init_params(key, shape):
    """Deterministic PyTorch-Linear-style init (uniform +/- 1/sqrt(fan_in))."""
    weights, biases = [], []
    for i in range(len(shape) - 1):
        fan_in, fan_out = shape[i], shape[i + 1]
        key, kw, kb = jax.random.split(key, 3)
        bound = 1.0 / jnp.sqrt(fan_in)
        # stored as [in, out] (transposed relative to torch's [out, in])
        w = jax.random.uniform(kw, (fan_in, fan_out), jnp.float32, -bound, bound)
        b = jax.random.uniform(kb, (1, fan_out), jnp.float32, -bound, bound)
        weights.append(w)
        biases.append(b)
    return weights, biases


def reference_forward(x, weights, biases, *, stoch=True, log_var=True):
    h = x
    n = len(weights)
    for i, (w, b) in enumerate(zip(weights, biases)):
        h = h @ w + b
        if i != n - 1:
            h = jnp.maximum(h, 0.0)
    final_dim = weights[-1].shape[1]
    d = final_dim // 2 if stoch else final_dim
    means = h[:, :d]
    if stoch:
        variances = jnp.exp(h[:, d:]) if log_var else jnp.square(h[:, d:])
        return means, variances
    return means


if __name__ == "__main__":
    # Network shape [input, hidden, hidden, output]; stoch=True => output_dim = 8.
    net_shape = [32, 64, 64, 16]
    batch = 256

    key = jax.random.PRNGKey(0)
    key, kx = jax.random.split(key)
    x = jax.random.normal(kx, (batch, net_shape[0]), dtype=jnp.float32)
    weights, biases = init_params(key, net_shape)

    # Fast path: bf16 operands & outputs, f32 accumulation (default batch_tile=512
    # -> single grid step for this small batch; no duplicated weight DMA).
    fwd = jax.jit(functools.partial(ffrelunet_forward, stoch=True, log_var=True))
    means, variances = fwd(x, weights, biases)
    jax.block_until_ready((means, variances))

    ref_means, ref_vars = reference_forward(x, weights, biases, stoch=True, log_var=True)
    assert means.shape == (batch, net_shape[-1] // 2)
    assert variances.shape == (batch, net_shape[-1] // 2)
    assert jnp.allclose(means.astype(jnp.float32), ref_means,
                        atol=5e-2, rtol=5e-2), "bf16 means mismatch"
    assert jnp.allclose(variances.astype(jnp.float32), ref_vars,
                        atol=5e-2, rtol=5e-2), "bf16 variances mismatch"

    # Full-precision path (f32 operands / f32 outputs) with a smaller batch_tile so
    # grid=(2,) also exercises the multi-step pipeline; must track reference tightly.
    means32, vars32 = ffrelunet_forward(x, weights, biases, stoch=True, log_var=True,
                                        batch_tile=128, compute_dtype=jnp.float32)
    jax.block_until_ready((means32, vars32))
    assert jnp.allclose(means32, ref_means, atol=1e-4, rtol=1e-4)
    assert jnp.allclose(vars32, ref_vars, atol=1e-4, rtol=1e-4)

    # Non-stochastic head (single output) sanity check.
    m_only = ffrelunet_forward(x, weights, biases, stoch=False,
                               compute_dtype=jnp.float32)
    ref_m_only = reference_forward(x, weights, biases, stoch=False)
    assert jnp.allclose(m_only, ref_m_only, atol=1e-4, rtol=1e-4)

    print("KERNEL_OK")
</pallas_src>

<mosaic_0001>
module attributes {stable_mosaic.version = 11 : i64} {
  func.func @_ffrelunet_kernel(%arg0: i32, %arg1: memref<256x32xbf16, #tpu.memory_space<vmem>>, %arg2: memref<32x128xbf16, #tpu.memory_space<vmem>>, %arg3: memref<1x128xf32, #tpu.memory_space<vmem>>, %arg4: memref<128x128xbf16, #tpu.memory_space<vmem>>, %arg5: memref<1x128xf32, #tpu.memory_space<vmem>>, %arg6: memref<128x128xbf16, #tpu.memory_space<vmem>>, %arg7: memref<1x128xf32, #tpu.memory_space<vmem>>, %arg8: memref<256x128xbf16, #tpu.memory_space<vmem>>) attributes {dimension_semantics = [#tpu.dimension_semantics<parallel>], iteration_bounds = array<i64: 1>, scalar_prefetch = 0 : i64, scratch_operands = 0 : i64, tpu.core_type = #tpu.core_type<tc>, window_params = [{transform_indices = @transform_0, window_bounds = array<i64: 256, 32>}, {pipeline_mode = #tpu.pipeline_mode<synchronous>, transform_indices = @transform_1, window_bounds = array<i64: 32, 128>}, {pipeline_mode = #tpu.pipeline_mode<synchronous>, transform_indices = @transform_2, window_bounds = array<i64: 1, 128>}, {pipeline_mode = #tpu.pipeline_mode<synchronous>, transform_indices = @transform_3, window_bounds = array<i64: 128, 128>}, {pipeline_mode = #tpu.pipeline_mode<synchronous>, transform_indices = @transform_4, window_bounds = array<i64: 1, 128>}, {pipeline_mode = #tpu.pipeline_mode<synchronous>, transform_indices = @transform_5, window_bounds = array<i64: 128, 128>}, {pipeline_mode = #tpu.pipeline_mode<synchronous>, transform_indices = @transform_6, window_bounds = array<i64: 1, 128>}, {transform_indices = @transform_7, window_bounds = array<i64: 256, 128>}]} {
    %c0 = arith.constant 0 : index
    %c0_0 = arith.constant 0 : index
    %0 = vector.load %arg1[%c0, %c0_0] : memref<256x32xbf16, #tpu.memory_space<vmem>>, vector<256x32xbf16>
    %c0_1 = arith.constant 0 : index
    %c0_2 = arith.constant 0 : index
    %1 = vector.load %arg2[%c0_1, %c0_2] : memref<32x128xbf16, #tpu.memory_space<vmem>>, vector<32x128xbf16>
    %cst = arith.constant dense<0.000000e+00> : vector<256x128xf32>
    %2 = tpu.matmul %0, %1, %cst {dimension_numbers = #tpu.dot_dimension_numbers<[1], [0], [0], [1], [0, 0, 1, 1], [], []>} : vector<256x32xbf16>, vector<32x128xbf16>, vector<256x128xf32> -> vector<256x128xf32>
    %c0_3 = arith.constant 0 : index
    %c0_4 = arith.constant 0 : index
    %3 = vector.load %arg3[%c0_3, %c0_4] : memref<1x128xf32, #tpu.memory_space<vmem>>, vector<1x128xf32>
    %4 = vector.broadcast %3 : vector<1x128xf32> to vector<256x128xf32>
    %5 = arith.addf %2, %4 : vector<256x128xf32>
    %cst_5 = arith.constant 0.000000e+00 : f32
    %6 = vector.broadcast %cst_5 : f32 to vector<256x128xf32>
    %7 = arith.maximumf %5, %6 : vector<256x128xf32>
    %8 = arith.truncf %7 : vector<256x128xf32> to vector<256x128xbf16>
    %c0_6 = arith.constant 0 : index
    %c0_7 = arith.constant 0 : index
    %9 = vector.load %arg4[%c0_6, %c0_7] : memref<128x128xbf16, #tpu.memory_space<vmem>>, vector<128x128xbf16>
    %cst_8 = arith.constant dense<0.000000e+00> : vector<256x128xf32>
    %10 = tpu.matmul %8, %9, %cst_8 {dimension_numbers = #tpu.dot_dimension_numbers<[1], [0], [0], [1], [0, 0, 1, 1], [], []>} : vector<256x128xbf16>, vector<128x128xbf16>, vector<256x128xf32> -> vector<256x128xf32>
    %c0_9 = arith.constant 0 : index
    %c0_10 = arith.constant 0 : index
    %11 = vector.load %arg5[%c0_9, %c0_10] : memref<1x128xf32, #tpu.memory_space<vmem>>, vector<1x128xf32>
    %12 = vector.broadcast %11 : vector<1x128xf32> to vector<256x128xf32>
    %13 = arith.addf %10, %12 : vector<256x128xf32>
    %cst_11 = arith.constant 0.000000e+00 : f32
    %14 = vector.broadcast %cst_11 : f32 to vector<256x128xf32>
    %15 = arith.maximumf %13, %14 : vector<256x128xf32>
    %16 = arith.truncf %15 : vector<256x128xf32> to vector<256x128xbf16>
    %c0_12 = arith.constant 0 : index
    %c0_13 = arith.constant 0 : index
    %17 = vector.load %arg6[%c0_12, %c0_13] : memref<128x128xbf16, #tpu.memory_space<vmem>>, vector<128x128xbf16>
    %cst_14 = arith.constant dense<0.000000e+00> : vector<256x128xf32>
    %18 = tpu.matmul %16, %17, %cst_14 {dimension_numbers = #tpu.dot_dimension_numbers<[1], [0], [0], [1], [0, 0, 1, 1], [], []>} : vector<256x128xbf16>, vector<128x128xbf16>, vector<256x128xf32> -> vector<256x128xf32>
    %c0_15 = arith.constant 0 : index
    %c0_16 = arith.constant 0 : index
    %19 = vector.load %arg7[%c0_15, %c0_16] : memref<1x128xf32, #tpu.memory_space<vmem>>, vector<1x128xf32>
    %20 = vector.broadcast %19 : vector<1x128xf32> to vector<256x128xf32>
    %21 = arith.addf %18, %20 : vector<256x128xf32>
    %22 = tpu.iota {dimensions = array<i32: 1>} : vector<256x128xi32>
    %c8_i32 = arith.constant 8 : i32
    %23 = vector.broadcast %c8_i32 : i32 to vector<256x128xi32>
    %24 = arith.cmpi sge, %22, %23 : vector<256x128xi32>
    %c16_i32 = arith.constant 16 : i32
    %25 = vector.broadcast %c16_i32 : i32 to vector<256x128xi32>
    %26 = arith.cmpi slt, %22, %25 : vector<256x128xi32>
    %27 = arith.andi %24, %26 : vector<256x128xi1>
    %28 = math.exp %21 : vector<256x128xf32>
    %29 = arith.select %27, %28, %21 : vector<256x128xi1>, vector<256x128xf32>
    %30 = arith.truncf %29 : vector<256x128xf32> to vector<256x128xbf16>
    %c0_17 = arith.constant 0 : index
    %c0_18 = arith.constant 0 : index
    %31 = vector.load %arg8[%c0_17, %c0_18] : memref<256x128xbf16, #tpu.memory_space<vmem>>, vector<256x128xbf16>
    tpu.vector_store %arg8[%c0_17, %c0_18], %30 {strides = array<i32>} : memref<256x128xbf16, #tpu.memory_space<vmem>>, vector<256x128xbf16>,
    return
  }
  func.func @transform_0(%arg0: i32) -> (i32, i32) {
    %c0_i32 = arith.constant 0 : i32
    %c0_i32_0 = arith.constant 0 : i32
    return %arg0, %c0_i32 : i32, i32
  }
  func.func @transform_1(%arg0: i32) -> (i32, i32) {
    %c0_i32 = arith.constant 0 : i32
    %c0_i32_0 = arith.constant 0 : i32
    %c0_i32_1 = arith.constant 0 : i32
    return %c0_i32, %c0_i32_0 : i32, i32
  }
  func.func @transform_2(%arg0: i32) -> (i32, i32) {
    %c0_i32 = arith.constant 0 : i32
    %c0_i32_0 = arith.constant 0 : i32
    %c0_i32_1 = arith.constant 0 : i32
    return %c0_i32, %c0_i32_0 : i32, i32
  }
  func.func @transform_3(%arg0: i32) -> (i32, i32) {
    %c0_i32 = arith.constant 0 : i32
    %c0_i32_0 = arith.constant 0 : i32
    %c0_i32_1 = arith.constant 0 : i32
    return %c0_i32, %c0_i32_0 : i32, i32
  }
  func.func @transform_4(%arg0: i32) -> (i32, i32) {
    %c0_i32 = arith.constant 0 : i32
    %c0_i32_0 = arith.constant 0 : i32
    %c0_i32_1 = arith.constant 0 : i32
    return %c0_i32, %c0_i32_0 : i32, i32
  }
  func.func @transform_5(%arg0: i32) -> (i32, i32) {
    %c0_i32 = arith.constant 0 : i32
    %c0_i32_0 = arith.constant 0 : i32
    %c0_i32_1 = arith.constant 0 : i32
    return %c0_i32, %c0_i32_0 : i32, i32
  }
  func.func @transform_6(%arg0: i32) -> (i32, i32) {
    %c0_i32 = arith.constant 0 : i32
    %c0_i32_0 = arith.constant 0 : i32
    %c0_i32_1 = arith.constant 0 : i32
    return %c0_i32, %c0_i32_0 : i32, i32
  }
  func.func @transform_7(%arg0: i32) -> (i32, i32) {
    %c0_i32 = arith.constant 0 : i32
    %c0_i32_0 = arith.constant 0 : i32
    return %arg0, %c0_i32 : i32, i32
  }
}

</mosaic_0001>

<bundles_post_ra>
// kernel: ffrelunet_forward.1
= control target key start
LH: loop header
LB: loop body
LE: loop exit
PB: predicated region body
PF: predicated region fallthrough
CT: control target
= control target key end

     0   :  { %vm162_vm0 = vcmask 261120   ;;  %s2136_s1 = inlined_call_operand.vmem [shape: bf16[32,128], index: 1, kind: input, shape index: {}]   ;;  %s2137_s0 = inlined_call_operand.vmem [shape: bf16[256,32], index: 0, kind: input, shape index: {}]   ;;  %s2138_s3 = inlined_call_operand.vmem [shape: bf16[128,128], index: 3, kind: input, shape index: {}]   ;;  %s2139_s5 = inlined_call_operand.vmem [shape: bf16[128,128], index: 5, kind: input, shape index: {}]   ;;  %s2140_s2 = inlined_call_operand.vmem [shape: f32[1,128], index: 2, kind: input, shape index: {}]   ;;  %s2141_s4 = inlined_call_operand.vmem [shape: f32[1,128], index: 4, kind: input, shape index: {}]   ;;  %s2142_s6 = inlined_call_operand.vmem [shape: f32[1,128], index: 6, kind: input, shape index: {}]   ;;  %s2143_s7 = inlined_call_operand.vmem [shape: bf16[256,128], index: 7, kind: output, shape index: {}]  }
   0x1   :  { %v1611_v0 = vld [vmem:[%s2136_s1] sm:$0xff]   ;;  %v1612_v1 = vld [vmem:[%s2136_s1 + $0x8] sm:$0xff]   ;;  %v1615_v4 = vld [vmem:[%s2137_s0 + $0x10] sm:$0xff]  }
   0x2   :  { %1475 = vmatprep.subr.bf16.mxu0 %v1611_v0  ;;  %v1613_v2 = vld [vmem:[%s2137_s0] sm:$0xff]   ;;  %1607 = vmatprep.subr.bf16.mxu1 %v1611_v0  ;;  %v1614_v3 = vld [vmem:[%s2137_s0 + $0x8] sm:$0xff]   ;;  %v1623_v7 = vld [vmem:[%s2137_s0 + $0x50] sm:$0xff]  }
   0x3   :  { %1476 = vmatpush3.bf16.msra.mxu0 %v1611_v0  ;;  %1609 = vmatpush3.bf16.msra.mxu1 %v1611_v0  ;;  %v1621_v5 = vld [vmem:[%s2137_s0 + $0x40] sm:$0xff]   ;;  %v1622_v6 = vld [vmem:[%s2137_s0 + $0x48] sm:$0xff]   ;;  %v1616_v8 = vld [vmem:[%s2137_s0 + $0x18] sm:$0xff]  }
   0x4   :  { %1477 = vmatprep.subr.bf16.mxu0 %v1612_v1  ;;  %1479 = vmatprep.mubr.msk.bf16.mxu0 %vm162_vm0, %v1613_v2  ;;  %v1617_v9 = vld [vmem:[%s2137_s0 + $0x20] sm:$0xff]   ;;  %v1624_v10 = vld [vmem:[%s2137_s0 + $0x58] sm:$0xff]   ;;  %v1630_v13 = vld [vmem:[%s2138_s3 + $0x8] sm:$0xff]  }
   0x5   :  { %1608 = vmatprep.subr.bf16.mxu1 %v1612_v1  ;;  %1495 = vmatprep.mubr.msk.bf16.mxu1 %vm162_vm0, %v1621_v5  ;;  %v1625_v11 = vld [vmem:[%s2137_s0 + $0x60] sm:$0xff]   ;;  %v1618_v14 = vld [vmem:[%s2137_s0 + $0x28] sm:$0xff]   ;;  %v1619_v15 = vld [vmem:[%s2137_s0 + $0x30] sm:$0xff]  }
   0x6   :  { %v1629_v12 = vld [vmem:[%s2138_s3] sm:$0xff]   ;;  %v1631_v16 = vld [vmem:[%s2138_s3 + $0x10] sm:$0xff]   ;;  %v1626_v17 = vld [vmem:[%s2137_s0 + $0x68] sm:$0xff]  }
   0x7   :  { %1478 = vmatpush3.bf16.msra.mxu0 %v1612_v1  ;;  %1610 = vmatpush3.bf16.msra.mxu1 %v1612_v1  ;;  %v1627_v18 = vld [vmem:[%s2137_s0 + $0x70] sm:$0xff]   ;;  %v1632_v19 = vld [vmem:[%s2138_s3 + $0x18] sm:$0xff]   ;;  %v1633_v21 = vld [vmem:[%s2138_s3 + $0x20] sm:$0xff]  }
   0x8   :  { %1511 = vmatprep.subr.bf16.mxu1 %v1629_v12  ;;  %v1620_v20 = vld [vmem:[%s2137_s0 + $0x38] sm:$0xff]   ;;  %v1634_v23 = vld [vmem:[%s2138_s3 + $0x28] sm:$0xff]   ;;  %v1635_v24 = vld [vmem:[%s2138_s3 + $0x30] sm:$0xff]  }
   0x9   :  { %v1628_v22 = vld [vmem:[%s2137_s0 + $0x78] sm:$0xff]   ;;  %v1637_v26 = vld [vmem:[%s2139_s5] sm:$0xff]   ;;  %v1638_v27 = vld [vmem:[%s2139_s5 + $0x8] sm:$0xff]  }
   0xa   :  { %1480 = vmatmul.mubr.msk.bf16.vlgmr.msra.gmra.mrb[0].mxu0 %vm162_vm0, %v1614_v3  ;;  %1496 = vmatmul.mubr.msk.bf16.vlgmr.msra.gmra.mrb[0].mxu1 %vm162_vm0, %v1622_v6  ;;  %v1636_v25 = vld [vmem:[%s2138_s3 + $0x38] sm:$0xff]   ;;  %v1639_v28 = vld [vmem:[%s2139_s5 + $0x10] sm:$0xff]   ;;  %v1641_v30 = vld [vmem:[%s2139_s5 + $0x20] sm:$0xff]  }
   0xb   :  { %1483 = vmatprep.mubr.msk.bf16.mxu0 %vm162_vm0, %v1615_v4  ;;  %1499 = vmatprep.mubr.msk.bf16.mxu1 %vm162_vm0, %v1623_v7  ;;  %v1640_v29 = vld [vmem:[%s2139_s5 + $0x18] sm:$0xff]   ;;  %v1642_v31 = vld [vmem:[%s2139_s5 + $0x28] sm:$0xff]   ;;  %v1864_v32 = vld [vmem:[%s2140_s2] ss:$0 sm:$0xff] }
   0xc   :  { %1512 = vmatpush3.bf16.msra.mxu1 %v1629_v12  ;;  %1559 = vmatprep.subr.bf16.mxu0 %v1637_v26 }
   0xd   :  { %1513 = vmatprep.subr.bf16.mxu1 %v1630_v13  ;;  %1560 = vmatpush3.bf16.msra.mxu0 %v1637_v26 }
   0xe   :  { %1561 = vmatprep.subr.bf16.mxu0 %v1638_v27 }
  0x10   :  { %1514 = vmatpush3.bf16.msra.mxu1 %v1630_v13 }
  0x11   :  { %1515 = vmatprep.subr.bf16.mxu1 %v1631_v16  ;;  %1562 = vmatpush3.bf16.msra.mxu0 %v1638_v27 }
  0x12   :  { %1484 = vmatmul.mubr.msk.bf16.gmra.mrb[4].mxu0 %vm162_vm0, %v1616_v8  ;;  %1500 = vmatmul.mubr.msk.bf16.gmra.mrb[4].mxu1 %vm162_vm0, %v1624_v10 }
  0x13   :  { %1487 = vmatprep.mubr.msk.bf16.mxu0 %vm162_vm0, %v1617_v9  ;;  %1503 = vmatprep.mubr.msk.bf16.mxu1 %vm162_vm0, %v1625_v11 }
  0x14   :  { %1516 = vmatpush3.bf16.msra.mxu1 %v1631_v16  ;;  %1563 = vmatprep.subr.bf16.mxu0 %v1639_v28 }
  0x15   :  { %1517 = vmatprep.subr.bf16.mxu1 %v1632_v19  ;;  %1564 = vmatpush3.bf16.msra.mxu0 %v1639_v28 }
  0x16   :  { %1565 = vmatprep.subr.bf16.mxu0 %v1640_v29 }
  0x18   :  { %1518 = vmatpush3.bf16.msra.mxu1 %v1632_v19 }
  0x19   :  { %1519 = vmatprep.subr.bf16.mxu1 %v1633_v21  ;;  %1566 = vmatpush3.bf16.msra.mxu0 %v1640_v29 }
  0x1a   :  { %1488 = vmatmul.mubr.msk.bf16.gmra.mrb[8].mxu0 %vm162_vm0, %v1618_v14  ;;  %1504 = vmatmul.mubr.msk.bf16.gmra.mrb[8].mxu1 %vm162_vm0, %v1626_v17 }
  0x1b   :  { %1491 = vmatprep.mubr.msk.bf16.mxu0 %vm162_vm0, %v1619_v15  ;;  %1507 = vmatprep.mubr.msk.bf16.mxu1 %vm162_vm0, %v1627_v18 }
  0x1c   :  { %1520 = vmatpush3.bf16.msra.mxu1 %v1633_v21  ;;  %1567 = vmatprep.subr.bf16.mxu0 %v1641_v30 }
  0x1d   :  { %1521 = vmatprep.subr.bf16.mxu1 %v1634_v23  ;;  %1568 = vmatpush3.bf16.msra.mxu0 %v1641_v30 }
  0x1e   :  { %1569 = vmatprep.subr.bf16.mxu0 %v1642_v31 }
  0x20   :  { %1522 = vmatpush3.bf16.msra.mxu1 %v1634_v23 }
  0x21   :  { %1523 = vmatprep.subr.bf16.mxu1 %v1635_v24  ;;  %1570 = vmatpush3.bf16.msra.mxu0 %v1642_v31 }
  0x22   :  { %1492 = vmatmul.mubr.msk.bf16.gmra.mrb[12].mxu0 %vm162_vm0, %v1620_v20  ;;  %1508 = vmatmul.mubr.msk.bf16.gmra.mrb[12].mxu1 %vm162_vm0, %v1628_v22 }
  0x24   :  { %1524 = vmatpush3.bf16.msra.mxu1 %v1635_v24 }
  0x25   :  { %1525 = vmatprep.subr.bf16.mxu1 %v1636_v25 }
  0x28   :  { %1526 = vmatpush3.bf16.msra.mxu1 %v1636_v25 }
  0xdd   :  { %v1481_v33 = vpop.f32.mrb[0].mxu0  ;;  %v1497_v40 = vpop.f32.mrb[0].mxu1 }
  0xde   :  { %v254_v34 = vadd.f32 %v1481_v33, %v1864_v32  ;;  %v245_v35 = vpop.f32.mrb[1].mxu0  ;;  %v318_v42 = vadd.f32 %v1497_v40, %v1864_v32  ;;  %v309_v43 = vpop.f32.mrb[1].mxu1 }
  0xdf   :  { %v246_v36 = vadd.f32 %v1864_v32, %v245_v35  ;;  %v1482_v37 = vpop.f32.mrb[2].mxu0  ;;  %v310_v46 = vadd.f32 %v1864_v32, %v309_v43  ;;  %v1498_v47 = vpop.f32.mrb[2].mxu1 }
  0xe0   :  { %v257_v38 = vadd.f32 %v1482_v37, %v1864_v32  ;;  %v248_v39 = vpop.f32.mrb[3].mxu0  ;;  %v374_v44 = vmax.f32 %v254_v34, 0.0  ;;  %v390_v50 = vmax.f32 %v318_v42, 0.0  ;;  %v321_v51 = vadd.f32 %v1498_v47, %v1864_v32  ;;  %v312_v52 = vpop.f32.mrb[3].mxu1 }
  0xe1   :  { %v249_v41 = vadd.f32 %v1864_v32, %v248_v39  ;;  %v372_v48 = vmax.f32 %v246_v36, 0.0  ;;  %v388_v54 = vmax.f32 %v310_v46, 0.0  ;;  %v313_v55 = vadd.f32 %v1864_v32, %v312_v52 }
  0xe2   :  { %v375_v45 = vmax.f32 %v257_v38, 0.0  ;;  %v391_v58 = vmax.f32 %v321_v51, 0.0 }
  0xe3   :  { %v373_v49 = vmax.f32 %v249_v41, 0.0  ;;  %v389_v61 = vmax.f32 %v313_v55, 0.0 }
  0xe4   :  { %v405_v53 = vpack.c.bf16 %v375_v45, %v374_v44  ;;  %v1876_v0 = vpack.c.bf16 %v391_v58, %v390_v50 }
  0xe5   :  { %v404_v56 = vpack.c.bf16 %v373_v49, %v372_v48  ;;  %v1485_v57 = vpop.f32.mrb[4].mxu0  ;;  %v1879_v3 = vpack.c.bf16 %v389_v61, %v388_v54  ;;  %v1501_v4 = vpop.f32.mrb[4].mxu1 }
  0xe6   :  { %v270_v59 = vadd.f32 %v1485_v57, %v1864_v32  ;;  %v261_v60 = vpop.f32.mrb[5].mxu0  ;;  %v334_v6 = vadd.f32 %v1501_v4, %v1864_v32  ;;  %v325_v7 = vpop.f32.mrb[5].mxu1 }
  0xe7   :  { %v262_v62 = vadd.f32 %v1864_v32, %v261_v60  ;;  %v1486_v63 = vpop.f32.mrb[6].mxu0  ;;  %1527 = vmatprep.mubr.bf16.mxu1 %v404_v56  ;;  %v326_v10 = vadd.f32 %v1864_v32, %v325_v7  ;;  %v1502_v11 = vpop.f32.mrb[6].mxu1 }
  0xe8   :  { %v273_v1 = vadd.f32 %v1486_v63, %v1864_v32  ;;  %v264_v2 = vpop.f32.mrb[7].mxu0  ;;  %1528 = vmatmul.mubr.bf16.vlgmr.msra.gmra.mrb[16].mxu1 %v405_v53  ;;  %v378_v8 = vmax.f32 %v270_v59, 0.0  ;;  %v394_v14 = vmax.f32 %v334_v6, 0.0  ;;  %v337_v15 = vadd.f32 %v1502_v11, %v1864_v32  ;;  %v328_v16 = vpop.f32.mrb[7].mxu1 }
  0xe9   :  { %v265_v5 = vadd.f32 %v1864_v32, %v264_v2  ;;  %v376_v12 = vmax.f32 %v262_v62, 0.0  ;;  %v392_v18 = vmax.f32 %v326_v10, 0.0  ;;  %v329_v19 = vadd.f32 %v1864_v32, %v328_v16 }
  0xea   :  { %v379_v9 = vmax.f32 %v273_v1, 0.0  ;;  %v395_v22 = vmax.f32 %v337_v15, 0.0 }
  0xeb   :  { %v377_v13 = vmax.f32 %v265_v5, 0.0  ;;  %v393_v25 = vmax.f32 %v329_v19, 0.0 }
  0xec   :  { %v407_v17 = vpack.c.bf16 %v379_v9, %v378_v8  ;;  %v415_v28 = vpack.c.bf16 %v395_v22, %v394_v14 }
  0xed   :  { %v406_v20 = vpack.c.bf16 %v377_v13, %v376_v12  ;;  %v1489_v21 = vpop.f32.mrb[8].mxu0  ;;  %v414_v31 = vpack.c.bf16 %v393_v25, %v392_v18  ;;  %v1505_v33 = vpop.f32.mrb[8].mxu1 }
  0xee   :  { %v286_v23 = vadd.f32 %v1489_v21, %v1864_v32  ;;  %v277_v24 = vpop.f32.mrb[9].mxu0  ;;  %v350_v35 = vadd.f32 %v1505_v33, %v1864_v32  ;;  %v341_v36 = vpop.f32.mrb[9].mxu1 }
  0xef   :  { %v278_v26 = vadd.f32 %v1864_v32, %v277_v24  ;;  %v1490_v27 = vpop.f32.mrb[10].mxu0  ;;  %1531 = vmatprep.mubr.bf16.mxu1 %v406_v20  ;;  %v342_v39 = vadd.f32 %v1864_v32, %v341_v36  ;;  %v1506_v40 = vpop.f32.mrb[10].mxu1  ;;  %v1644_v20 = vld [vmem:[%s2139_s5 + $0x38] sm:$0xff]  }
  0xf0   :  { %v289_v29 = vadd.f32 %v1490_v27, %v1864_v32  ;;  %v280_v30 = vpop.f32.mrb[11].mxu0  ;;  %1532 = vmatmul.mubr.bf16.gmra.mrb[20].mxu1 %v407_v17  ;;  %v382_v37 = vmax.f32 %v286_v23, 0.0  ;;  %v398_v43 = vmax.f32 %v350_v35, 0.0  ;;  %v353_v44 = vadd.f32 %v1506_v40, %v1864_v32  ;;  %v344_v45 = vpop.f32.mrb[11].mxu1 }
  0xf1   :  { %v281_v34 = vadd.f32 %v1864_v32, %v280_v30  ;;  %v380_v41 = vmax.f32 %v278_v26, 0.0  ;;  %v396_v47 = vmax.f32 %v342_v39, 0.0  ;;  %v345_v48 = vadd.f32 %v1864_v32, %v344_v45 }
  0xf2   :  { %v383_v38 = vmax.f32 %v289_v29, 0.0  ;;  %v399_v51 = vmax.f32 %v353_v44, 0.0 }
  0xf3   :  { %v381_v42 = vmax.f32 %v281_v34, 0.0  ;;  %v397_v54 = vmax.f32 %v345_v48, 0.0 }
  0xf4   :  { %v409_v46 = vpack.c.bf16 %v383_v38, %v382_v37  ;;  %v417_v57 = vpack.c.bf16 %v399_v51, %v398_v43 }
  0xf5   :  { %v408_v49 = vpack.c.bf16 %v381_v42, %v380_v41  ;;  %v1493_v50 = vpop.f32.mrb[12].mxu0  ;;  %v416_v60 = vpack.c.bf16 %v397_v54, %v396_v47  ;;  %v1509_v61 = vpop.f32.mrb[12].mxu1 }
  0xf6   :  { %v302_v52 = vadd.f32 %v1493_v50, %v1864_v32  ;;  %v293_v53 = vpop.f32.mrb[13].mxu0  ;;  %v366_v63 = vadd.f32 %v1509_v61, %v1864_v32  ;;  %v357_v1 = vpop.f32.mrb[13].mxu1 }
  0xf7   :  { %v294_v55 = vadd.f32 %v1864_v32, %v293_v53  ;;  %v1494_v56 = vpop.f32.mrb[14].mxu0  ;;  %1535 = vmatprep.mubr.bf16.mxu1 %v408_v49  ;;  %v358_v5 = vadd.f32 %v1864_v32, %v357_v1  ;;  %v1510_v6 = vpop.f32.mrb[14].mxu1 }
  0xf8   :  { %v305_v58 = vadd.f32 %v1494_v56, %v1864_v32  ;;  %v296_v59 = vpop.f32.mrb[15].mxu0  ;;  %1536 = vmatmul.mubr.bf16.gmra.mrb[24].mxu1 %v409_v46  ;;  %v386_v2 = vmax.f32 %v302_v52, 0.0  ;;  %v402_v9 = vmax.f32 %v366_v63, 0.0  ;;  %v369_v10 = vadd.f32 %v1510_v6, %v1864_v32  ;;  %v360_v11 = vpop.f32.mrb[15].mxu1 }
  0xf9   :  { %v297_v62 = vadd.f32 %v1864_v32, %v296_v59  ;;  %v384_v7 = vmax.f32 %v294_v55, 0.0  ;;  %v400_v13 = vmax.f32 %v358_v5, 0.0  ;;  %v361_v14 = vadd.f32 %v1864_v32, %v360_v11  ;;  %v1643_v32 = vld [vmem:[%s2139_s5 + $0x30] sm:$0xff]  }
  0xfa   :  { %v387_v4 = vmax.f32 %v305_v58, 0.0  ;;  %v403_v16 = vmax.f32 %v369_v10, 0.0  ;;  %1571 = vmatprep.subr.bf16.mxu0 %v1643_v32 }
  0xfb   :  { %v385_v8 = vmax.f32 %v297_v62, 0.0  ;;  %v401_v17 = vmax.f32 %v361_v14, 0.0  ;;  %1572 = vmatpush3.bf16.msra.mxu0 %v1643_v32 }
  0xfc   :  { %v411_v12 = vpack.c.bf16 %v387_v4, %v386_v2  ;;  %v419_v18 = vpack.c.bf16 %v403_v16, %v402_v9  ;;  %1573 = vmatprep.subr.bf16.mxu0 %v1644_v20 }
  0xfd   :  { %v410_v15 = vpack.c.bf16 %v385_v8, %v384_v7  ;;  %v418_v19 = vpack.c.bf16 %v401_v17, %v400_v13 }
  0xff   :  { %1539 = vmatprep.mubr.bf16.mxu1 %v410_v15  ;;  %1574 = vmatpush3.bf16.msra.mxu0 %v1644_v20 }
 0x100   :  { %1540 = vmatmul.mubr.bf16.gmra.mrb[28].mxu1 %v411_v12 }
 0x101   :  { %1543 = vmatprep.mubr.bf16.mxu1 %v1879_v3 }
 0x108   :  { %1544 = vmatmul.mubr.bf16.gmra.mrb[32].mxu1 %v1876_v0  ;;  %v1913_v0 = vld [vmem:[%s2141_s4] ss:$0 sm:$0xff] }
 0x109   :  { %1547 = vmatprep.mubr.bf16.mxu1 %v414_v31 }
 0x110   :  { %1548 = vmatmul.mubr.bf16.gmra.mrb[36].mxu1 %v415_v28 }
 0x111   :  { %1551 = vmatprep.mubr.bf16.mxu1 %v416_v60 }
 0x118   :  { %1552 = vmatmul.mubr.bf16.gmra.mrb[40].mxu1 %v417_v57 }
 0x119   :  { %1555 = vmatprep.mubr.bf16.mxu1 %v418_v19 }
 0x120   :  { %1556 = vmatmul.mubr.bf16.gmra.mrb[44].mxu1 %v419_v18 }
 0x1bb   :  { %v1529_v3 = vpop.f32.mrb[16].mxu1 }
 0x1bc   :  { %v534_v21 = vadd.f32 %v1529_v3, %v1913_v0  ;;  %v525_v22 = vpop.f32.mrb[17].mxu1 }
 0x1bd   :  { %v526_v23 = vadd.f32 %v1913_v0, %v525_v22  ;;  %v1530_v24 = vpop.f32.mrb[18].mxu1 }
 0x1be   :  { %v537_v25 = vadd.f32 %v1530_v24, %v1913_v0  ;;  %v528_v26 = vpop.f32.mrb[19].mxu1  ;;  %v654_v28 = vmax.f32 %v534_v21, 0.0 }
 0x1bf   :  { %v529_v27 = vadd.f32 %v1913_v0, %v528_v26  ;;  %v652_v30 = vmax.f32 %v526_v23, 0.0 }
 0x1c0   :  { %v655_v29 = vmax.f32 %v537_v25, 0.0 }
 0x1c1   :  { %v653_v31 = vmax.f32 %v529_v27, 0.0 }
 0x1c2   :  { %v685_v33 = vpack.c.bf16 %v655_v29, %v654_v28 }
 0x1c3   :  { %v684_v34 = vpack.c.bf16 %v653_v31, %v652_v30  ;;  %v1533_v35 = vpop.f32.mrb[20].mxu1 }
 0x1c4   :  { %v550_v36 = vadd.f32 %v1533_v35, %v1913_v0  ;;  %v541_v37 = vpop.f32.mrb[21].mxu1 }
 0x1c5   :  { %v542_v38 = vadd.f32 %v1913_v0, %v541_v37  ;;  %v1534_v39 = vpop.f32.mrb[22].mxu1  ;;  %1575 = vmatprep.mubr.bf16.mxu0 %v684_v34 }
 0x1c6   :  { %v553_v40 = vadd.f32 %v1534_v39, %v1913_v0  ;;  %v544_v41 = vpop.f32.mrb[23].mxu1  ;;  %1576 = vmatmul.mubr.bf16.vlgmr.msra.gmra.mrb[16].mxu0 %v685_v33  ;;  %v658_v43 = vmax.f32 %v550_v36, 0.0 }
 0x1c7   :  { %v545_v42 = vadd.f32 %v1913_v0, %v544_v41  ;;  %v656_v45 = vmax.f32 %v542_v38, 0.0 }
 0x1c8   :  { %v659_v44 = vmax.f32 %v553_v40, 0.0 }
 0x1c9   :  { %v657_v46 = vmax.f32 %v545_v42, 0.0 }
 0x1ca   :  { %v687_v47 = vpack.c.bf16 %v659_v44, %v658_v43 }
 0x1cb   :  { %v686_v48 = vpack.c.bf16 %v657_v46, %v656_v45  ;;  %v1537_v49 = vpop.f32.mrb[24].mxu1 }
 0x1cc   :  { %v566_v50 = vadd.f32 %v1537_v49, %v1913_v0  ;;  %v557_v51 = vpop.f32.mrb[25].mxu1 }
 0x1cd   :  { %v558_v52 = vadd.f32 %v1913_v0, %v557_v51  ;;  %v1538_v53 = vpop.f32.mrb[26].mxu1  ;;  %1579 = vmatprep.mubr.bf16.mxu0 %v686_v48 }
 0x1ce   :  { %v569_v54 = vadd.f32 %v1538_v53, %v1913_v0  ;;  %v560_v55 = vpop.f32.mrb[27].mxu1  ;;  %1580 = vmatmul.mubr.bf16.gmra.mrb[20].mxu0 %v687_v47  ;;  %v662_v57 = vmax.f32 %v566_v50, 0.0 }
 0x1cf   :  { %v561_v56 = vadd.f32 %v1913_v0, %v560_v55  ;;  %v660_v59 = vmax.f32 %v558_v52, 0.0 }
 0x1d0   :  { %v663_v58 = vmax.f32 %v569_v54, 0.0 }
 0x1d1   :  { %v661_v60 = vmax.f32 %v561_v56, 0.0 }
 0x1d2   :  { %v689_v61 = vpack.c.bf16 %v663_v58, %v662_v57 }
 0x1d3   :  { %v688_v62 = vpack.c.bf16 %v661_v60, %v660_v59  ;;  %v1541_v63 = vpop.f32.mrb[28].mxu1 }
 0x1d4   :  { %v582_v1 = vadd.f32 %v1541_v63, %v1913_v0  ;;  %v573_v2 = vpop.f32.mrb[29].mxu1 }
 0x1d5   :  { %v574_v4 = vadd.f32 %v1913_v0, %v573_v2  ;;  %v1542_v5 = vpop.f32.mrb[30].mxu1  ;;  %1583 = vmatprep.mubr.bf16.mxu0 %v688_v62 }
 0x1d6   :  { %v585_v6 = vadd.f32 %v1542_v5, %v1913_v0  ;;  %v576_v7 = vpop.f32.mrb[31].mxu1  ;;  %1584 = vmatmul.mubr.bf16.gmra.mrb[24].mxu0 %v689_v61  ;;  %v666_v9 = vmax.f32 %v582_v1, 0.0 }
 0x1d7   :  { %v577_v8 = vadd.f32 %v1913_v0, %v576_v7  ;;  %v664_v11 = vmax.f32 %v574_v4, 0.0 }
 0x1d8   :  { %v667_v10 = vmax.f32 %v585_v6, 0.0 }
 0x1d9   :  { %v665_v12 = vmax.f32 %v577_v8, 0.0  ;;  %v1950_v8 = vld [vmem:[%s2142_s6] ss:$0 sm:$0xff] }
 0x1da   :  { %v691_v13 = vpack.c.bf16 %v667_v10, %v666_v9 }
 0x1db   :  { %v690_v14 = vpack.c.bf16 %v665_v12, %v664_v11  ;;  %v1545_v15 = vpop.f32.mrb[32].mxu1 }
 0x1dc   :  { %v598_v16 = vadd.f32 %v1545_v15, %v1913_v0  ;;  %v589_v17 = vpop.f32.mrb[33].mxu1 }
 0x1dd   :  { %v590_v18 = vadd.f32 %v1913_v0, %v589_v17  ;;  %v1546_v19 = vpop.f32.mrb[34].mxu1  ;;  %1587 = vmatprep.mubr.bf16.mxu0 %v690_v14 }
 0x1de   :  { %v601_v32 = vadd.f32 %v1546_v19, %v1913_v0  ;;  %v592_v20 = vpop.f32.mrb[35].mxu1  ;;  %1588 = vmatmul.mubr.bf16.gmra.mrb[28].mxu0 %v691_v13  ;;  %v670_v21 = vmax.f32 %v598_v16, 0.0  ;;  %v932_v16 = vlaneseq }
 0x1df   :  { %v593_v3 = vadd.f32 %v1913_v0, %v592_v20  ;;  %v668_v23 = vmax.f32 %v590_v18, 0.0 }
 0x1e0   :  { %v671_v22 = vmax.f32 %v601_v32, 0.0  ;;  %v933_v20 = vand.u32 127, %v932_v16 }
 0x1e1   :  { %v669_v24 = vmax.f32 %v593_v3, 0.0 }
 0x1e2   :  { %v693_v25 = vpack.c.bf16 %v671_v22, %v670_v21  ;;  %vm934_vm1 = vcmp.ge.s32.totalorder %v933_v20, 8  ;;  %vm935_vm2 = vcmp.lt.s32.totalorder %v933_v20, 16 }
 0x1e3   :  { %v692_v26 = vpack.c.bf16 %v669_v24, %v668_v23  ;;  %v1549_v27 = vpop.f32.mrb[36].mxu1  ;;  %vm1963_vm3 = vmand %vm934_vm1, %vm935_vm2 }
 0x1e4   :  { %v614_v28 = vadd.f32 %v1549_v27, %v1913_v0  ;;  %v605_v29 = vpop.f32.mrb[37].mxu1 }
 0x1e5   :  { %v606_v30 = vadd.f32 %v1913_v0, %v605_v29  ;;  %v1550_v31 = vpop.f32.mrb[38].mxu1  ;;  %1591 = vmatprep.mubr.bf16.mxu0 %v692_v26 }
 0x1e6   :  { %v617_v33 = vadd.f32 %v1550_v31, %v1913_v0  ;;  %v608_v34 = vpop.f32.mrb[39].mxu1  ;;  %1592 = vmatmul.mubr.bf16.gmra.mrb[32].mxu0 %v693_v25  ;;  %v674_v36 = vmax.f32 %v614_v28, 0.0 }
 0x1e7   :  { %v609_v35 = vadd.f32 %v1913_v0, %v608_v34  ;;  %v672_v38 = vmax.f32 %v606_v30, 0.0 }
 0x1e8   :  { %v675_v37 = vmax.f32 %v617_v33, 0.0 }
 0x1e9   :  { %v673_v39 = vmax.f32 %v609_v35, 0.0 }
 0x1ea   :  { %v695_v40 = vpack.c.bf16 %v675_v37, %v674_v36 }
 0x1eb   :  { %v694_v41 = vpack.c.bf16 %v673_v39, %v672_v38  ;;  %v1553_v42 = vpop.f32.mrb[40].mxu1 }
 0x1ec   :  { %v630_v43 = vadd.f32 %v1553_v42, %v1913_v0  ;;  %v621_v44 = vpop.f32.mrb[41].mxu1 }
 0x1ed   :  { %v622_v45 = vadd.f32 %v1913_v0, %v621_v44  ;;  %v1554_v46 = vpop.f32.mrb[42].mxu1  ;;  %1595 = vmatprep.mubr.bf16.mxu0 %v694_v41 }
 0x1ee   :  { %v633_v47 = vadd.f32 %v1554_v46, %v1913_v0  ;;  %v624_v48 = vpop.f32.mrb[43].mxu1  ;;  %1596 = vmatmul.mubr.bf16.gmra.mrb[36].mxu0 %v695_v40  ;;  %v678_v50 = vmax.f32 %v630_v43, 0.0 }
 0x1ef   :  { %v625_v49 = vadd.f32 %v1913_v0, %v624_v48  ;;  %v676_v52 = vmax.f32 %v622_v45, 0.0 }
 0x1f0   :  { %v679_v51 = vmax.f32 %v633_v47, 0.0 }
 0x1f1   :  { %v677_v53 = vmax.f32 %v625_v49, 0.0 }
 0x1f2   :  { %v697_v54 = vpack.c.bf16 %v679_v51, %v678_v50 }
 0x1f3   :  { %v696_v55 = vpack.c.bf16 %v677_v53, %v676_v52  ;;  %v1557_v56 = vpop.f32.mrb[44].mxu1 }
 0x1f4   :  { %v646_v57 = vadd.f32 %v1557_v56, %v1913_v0  ;;  %v637_v58 = vpop.f32.mrb[45].mxu1 }
 0x1f5   :  { %v638_v59 = vadd.f32 %v1913_v0, %v637_v58  ;;  %v1558_v60 = vpop.f32.mrb[46].mxu1  ;;  %1599 = vmatprep.mubr.bf16.mxu0 %v696_v55 }
 0x1f6   :  { %v649_v61 = vadd.f32 %v1558_v60, %v1913_v0  ;;  %v640_v62 = vpop.f32.mrb[47].mxu1  ;;  %1600 = vmatmul.mubr.bf16.gmra.mrb[40].mxu0 %v697_v54  ;;  %v682_v1 = vmax.f32 %v646_v57, 0.0 }
 0x1f7   :  { %v641_v63 = vadd.f32 %v1913_v0, %v640_v62  ;;  %v680_v4 = vmax.f32 %v638_v59, 0.0 }
 0x1f8   :  { %v683_v2 = vmax.f32 %v649_v61, 0.0 }
 0x1f9   :  { %v681_v5 = vmax.f32 %v641_v63, 0.0 }
 0x1fa   :  { %v699_v6 = vpack.c.bf16 %v683_v2, %v682_v1 }
 0x1fb   :  { %v698_v7 = vpack.c.bf16 %v681_v5, %v680_v4 }
 0x1fd   :  { %1603 = vmatprep.mubr.bf16.mxu0 %v698_v7 }
 0x1fe   :  { %1604 = vmatmul.mubr.bf16.gmra.mrb[44].mxu0 %v699_v6 }
 0x299   :  { %v1577_v9 = vpop.f32.mrb[16].mxu0 }
 0x29a   :  { %v814_v10 = vadd.f32 %v1577_v9, %v1950_v8  ;;  %v805_v11 = vpop.f32.mrb[17].mxu0 }
 0x29b   :  { %v806_v12 = vadd.f32 %v1950_v8, %v805_v11  ;;  %v1578_v0 = vpop.f32.mrb[18].mxu0 }
 0x29c   :  { %v941_v13 = vmul.f32 1.442695, %v814_v10  ;;  %v817_v14 = vadd.f32 %v1578_v0, %v1950_v8  ;;  %v808_v15 = vpop.f32.mrb[19].mxu0 }
 0x29d   :  { %v937_v17 = vmul.f32 1.442695, %v806_v12  ;;  %v809_v18 = vadd.f32 %v1950_v8, %v808_v15 }
 0x29e   :  { %1645 = vpow2.f32 %v941_v13  ;;  %v943_v19 = vmul.f32 1.442695, %v817_v14 }
 0x29f   :  { %1647 = vpow2.f32 %v937_v17  ;;  %v939_v32 = vmul.f32 1.442695, %v809_v18 }
 0x2a0   :  { %1649 = vpow2.f32 %v943_v19 }
 0x2a1   :  { %1651 = vpow2.f32 %v939_v32  ;;  %v1581_v3 = vpop.f32.mrb[20].mxu0 }
 0x2a2   :  { %v830_v21 = vadd.f32 %v1581_v3, %v1950_v8  ;;  %v821_v22 = vpop.f32.mrb[21].mxu0 }
 0x2a3   :  { %v1958_v23 = vadd.f32 %v1950_v8, %v821_v22  ;;  %v1582_v24 = vpop.f32.mrb[22].mxu0 }
 0x2a4   :  { %v949_v25 = vmul.f32 1.442695, %v830_v21  ;;  %v833_v26 = vadd.f32 %v1582_v24, %v1950_v8  ;;  %v824_v27 = vpop.f32.mrb[23].mxu0 }
 0x2a5   :  { %v945_v28 = vmul.f32 1.442695, %v1958_v23  ;;  %v825_v29 = vadd.f32 %v1950_v8, %v824_v27 }
 0x2a6   :  { %1653 = vpow2.f32 %v949_v25  ;;  %v951_v30 = vmul.f32 1.442695, %v833_v26 }
 0x2a7   :  { %1655 = vpow2.f32 %v945_v28  ;;  %v947_v31 = vmul.f32 1.442695, %v825_v29 }
 0x2a8   :  { %v1646_v33 = vpop.eup %1645  ;;  %1657 = vpow2.f32 %v951_v30 }
 0x2a9   :  { %v1648_v35 = vpop.eup %1647  ;;  %1659 = vpow2.f32 %v947_v31  ;;  %v1585_v36 = vpop.f32.mrb[24].mxu0  ;;  %v1003_v41 = vsel %vm1963_vm3, %v1646_v33, %v814_v10 }
 0x2aa   :  { %v1650_v37 = vpop.eup %1649  ;;  %v1968_v38 = vadd.f32 %v1585_v36, %v1950_v8  ;;  %v837_v39 = vpop.f32.mrb[25].mxu0  ;;  %v1001_v42 = vsel %vm1963_vm3, %v1648_v35, %v806_v12 }
 0x2ab   :  { %v1652_v40 = vpop.eup %1651  ;;  %v1004_v43 = vsel %vm1963_vm3, %v1650_v37, %v817_v14  ;;  %v1977_v44 = vadd.f32 %v1950_v8, %v837_v39  ;;  %v1586_v45 = vpop.f32.mrb[26].mxu0 }
 0x2ac   :  { %v1322_v46 = vpack.c.bf16 %v1004_v43, %v1003_v41  ;;  %v1002_v47 = vsel %vm1963_vm3, %v1652_v40, %v809_v18  ;;  %v957_v48 = vmul.f32 1.442695, %v1968_v38  ;;  %v849_v49 = vadd.f32 %v1586_v45, %v1950_v8  ;;  %v840_v50 = vpop.f32.mrb[27].mxu0 }
 0x2ad   :  { %v1317_v51 = vpack.c.bf16 %v1002_v47, %v1001_v42  ;;  %v953_v52 = vmul.f32 1.442695, %v1977_v44  ;;  %v841_v53 = vadd.f32 %v1950_v8, %v840_v50 }
 0x2ae   :  { %1394 = vst [vmem:[%s2143_s7 + $0x8] sm:$0xff] %v1322_v46   ;;  %1661 = vpow2.f32 %v957_v48  ;;  %v959_v54 = vmul.f32 1.442695, %v849_v49 }
 0x2af   :  { %1318 = vst [vmem:[%s2143_s7] sm:$0xff] %v1317_v51   ;;  %1663 = vpow2.f32 %v953_v52  ;;  %v955_v55 = vmul.f32 1.442695, %v841_v53 }
 0x2b0   :  { %v1654_v56 = vpop.eup %1653  ;;  %1665 = vpow2.f32 %v959_v54 }
 0x2b1   :  { %v1656_v57 = vpop.eup %1655  ;;  %1667 = vpow2.f32 %v955_v55  ;;  %v1589_v58 = vpop.f32.mrb[28].mxu0  ;;  %v1007_v63 = vsel %vm1963_vm3, %v1654_v56, %v830_v21 }
 0x2b2   :  { %v1658_v59 = vpop.eup %1657  ;;  %v1992_v60 = vadd.f32 %v1589_v58, %v1950_v8  ;;  %v853_v61 = vpop.f32.mrb[29].mxu0  ;;  %v1005_v1 = vsel %vm1963_vm3, %v1656_v57, %v1958_v23 }
 0x2b3   :  { %v1660_v62 = vpop.eup %1659  ;;  %v1008_v2 = vsel %vm1963_vm3, %v1658_v59, %v833_v26  ;;  %v2002_v4 = vadd.f32 %v1950_v8, %v853_v61  ;;  %v1590_v5 = vpop.f32.mrb[30].mxu0 }
 0x2b4   :  { %v1332_v6 = vpack.c.bf16 %v1008_v2, %v1007_v63  ;;  %v1006_v7 = vsel %vm1963_vm3, %v1660_v62, %v825_v29  ;;  %v965_v9 = vmul.f32 1.442695, %v1992_v60  ;;  %v865_v10 = vadd.f32 %v1590_v5, %v1950_v8  ;;  %v856_v11 = vpop.f32.mrb[31].mxu0 }
 0x2b5   :  { %v1327_v12 = vpack.c.bf16 %v1006_v7, %v1005_v1  ;;  %v961_v0 = vmul.f32 1.442695, %v2002_v4  ;;  %v857_v13 = vadd.f32 %v1950_v8, %v856_v11 }
 0x2b6   :  { %1396 = vst [vmem:[%s2143_s7 + $0x18] sm:$0xff] %v1332_v6   ;;  %1669 = vpow2.f32 %v965_v9  ;;  %v967_v14 = vmul.f32 1.442695, %v865_v10 }
 0x2b7   :  { %1395 = vst [vmem:[%s2143_s7 + $0x10] sm:$0xff] %v1327_v12   ;;  %1671 = vpow2.f32 %v961_v0  ;;  %v963_v15 = vmul.f32 1.442695, %v857_v13 }
 0x2b8   :  { %v1662_v16 = vpop.eup %1661  ;;  %1673 = vpow2.f32 %v967_v14 }
 0x2b9   :  { %v1664_v17 = vpop.eup %1663  ;;  %1675 = vpow2.f32 %v963_v15  ;;  %v1593_v18 = vpop.f32.mrb[32].mxu0  ;;  %v1011_v21 = vsel %vm1963_vm3, %v1662_v16, %v1968_v38 }
 0x2ba   :  { %v1666_v19 = vpop.eup %1665  ;;  %v2017_v32 = vadd.f32 %v1593_v18, %v1950_v8  ;;  %v869_v20 = vpop.f32.mrb[33].mxu0  ;;  %v1009_v22 = vsel %vm1963_vm3, %v1664_v17, %v1977_v44 }
 0x2bb   :  { %v1668_v3 = vpop.eup %1667  ;;  %v1012_v23 = vsel %vm1963_vm3, %v1666_v19, %v849_v49  ;;  %v2028_v24 = vadd.f32 %v1950_v8, %v869_v20  ;;  %v1594_v25 = vpop.f32.mrb[34].mxu0 }
 0x2bc   :  { %v1342_v26 = vpack.c.bf16 %v1012_v23, %v1011_v21  ;;  %v1010_v27 = vsel %vm1963_vm3, %v1668_v3, %v841_v53  ;;  %v973_v28 = vmul.f32 1.442695, %v2017_v32  ;;  %v881_v29 = vadd.f32 %v1594_v25, %v1950_v8  ;;  %v872_v30 = vpop.f32.mrb[35].mxu0 }
 0x2bd   :  { %v1337_v31 = vpack.c.bf16 %v1010_v27, %v1009_v22  ;;  %v969_v33 = vmul.f32 1.442695, %v2028_v24  ;;  %v873_v35 = vadd.f32 %v1950_v8, %v872_v30 }
 0x2be   :  { %1398 = vst [vmem:[%s2143_s7 + $0x28] sm:$0xff] %v1342_v26   ;;  %1677 = vpow2.f32 %v973_v28  ;;  %v975_v36 = vmul.f32 1.442695, %v881_v29 }
 0x2bf   :  { %1397 = vst [vmem:[%s2143_s7 + $0x20] sm:$0xff] %v1337_v31   ;;  %1679 = vpow2.f32 %v969_v33  ;;  %v971_v37 = vmul.f32 1.442695, %v873_v35 }
 0x2c0   :  { %v1670_v38 = vpop.eup %1669  ;;  %1681 = vpow2.f32 %v975_v36 }
 0x2c1   :  { %v1672_v39 = vpop.eup %1671  ;;  %1683 = vpow2.f32 %v971_v37  ;;  %v1597_v40 = vpop.f32.mrb[36].mxu0  ;;  %v1015_v45 = vsel %vm1963_vm3, %v1670_v38, %v1992_v60 }
 0x2c2   :  { %v1674_v41 = vpop.eup %1673  ;;  %v2043_v42 = vadd.f32 %v1597_v40, %v1950_v8  ;;  %v885_v43 = vpop.f32.mrb[37].mxu0  ;;  %v1013_v46 = vsel %vm1963_vm3, %v1672_v39, %v2002_v4 }
 0x2c3   :  { %v1676_v44 = vpop.eup %1675  ;;  %v1016_v47 = vsel %vm1963_vm3, %v1674_v41, %v865_v10  ;;  %v2054_v48 = vadd.f32 %v1950_v8, %v885_v43  ;;  %v1598_v49 = vpop.f32.mrb[38].mxu0 }
 0x2c4   :  { %v1352_v50 = vpack.c.bf16 %v1016_v47, %v1015_v45  ;;  %v1014_v51 = vsel %vm1963_vm3, %v1676_v44, %v857_v13  ;;  %v981_v52 = vmul.f32 1.442695, %v2043_v42  ;;  %v897_v53 = vadd.f32 %v1598_v49, %v1950_v8  ;;  %v888_v54 = vpop.f32.mrb[39].mxu0 }
 0x2c5   :  { %v1347_v55 = vpack.c.bf16 %v1014_v51, %v1013_v46  ;;  %v977_v56 = vmul.f32 1.442695, %v2054_v48  ;;  %v889_v57 = vadd.f32 %v1950_v8, %v888_v54 }
 0x2c6   :  { %1400 = vst [vmem:[%s2143_s7 + $0x38] sm:$0xff] %v1352_v50   ;;  %1685 = vpow2.f32 %v981_v52  ;;  %v983_v58 = vmul.f32 1.442695, %v897_v53 }
 0x2c7   :  { %1399 = vst [vmem:[%s2143_s7 + $0x30] sm:$0xff] %v1347_v55   ;;  %1687 = vpow2.f32 %v977_v56  ;;  %v979_v59 = vmul.f32 1.442695, %v889_v57 }
 0x2c8   :  { %v1678_v60 = vpop.eup %1677  ;;  %1689 = vpow2.f32 %v983_v58 }
 0x2c9   :  { %v1680_v61 = vpop.eup %1679  ;;  %1691 = vpow2.f32 %v979_v59  ;;  %v1601_v62 = vpop.f32.mrb[40].mxu0  ;;  %v1019_v5 = vsel %vm1963_vm3, %v1678_v60, %v2017_v32 }
 0x2ca   :  { %v1682_v63 = vpop.eup %1681  ;;  %v910_v1 = vadd.f32 %v1601_v62, %v1950_v8  ;;  %v901_v2 = vpop.f32.mrb[41].mxu0  ;;  %v1017_v6 = vsel %vm1963_vm3, %v1680_v61, %v2028_v24 }
 0x2cb   :  { %v1684_v4 = vpop.eup %1683  ;;  %v1020_v7 = vsel %vm1963_vm3, %v1682_v63, %v881_v29  ;;  %v902_v9 = vadd.f32 %v1950_v8, %v901_v2  ;;  %v1602_v10 = vpop.f32.mrb[42].mxu0 }
 0x2cc   :  { %v1362_v11 = vpack.c.bf16 %v1020_v7, %v1019_v5  ;;  %v1018_v12 = vsel %vm1963_vm3, %v1684_v4, %v873_v35  ;;  %v989_v0 = vmul.f32 1.442695, %v910_v1  ;;  %v913_v13 = vadd.f32 %v1602_v10, %v1950_v8  ;;  %v904_v14 = vpop.f32.mrb[43].mxu0 }
 0x2cd   :  { %v1357_v15 = vpack.c.bf16 %v1018_v12, %v1017_v6  ;;  %v985_v16 = vmul.f32 1.442695, %v902_v9  ;;  %v905_v17 = vadd.f32 %v1950_v8, %v904_v14 }
 0x2ce   :  { %1402 = vst [vmem:[%s2143_s7 + $0x48] sm:$0xff] %v1362_v11   ;;  %1693 = vpow2.f32 %v989_v0  ;;  %v991_v18 = vmul.f32 1.442695, %v913_v13 }
 0x2cf   :  { %1401 = vst [vmem:[%s2143_s7 + $0x40] sm:$0xff] %v1357_v15   ;;  %1695 = vpow2.f32 %v985_v16  ;;  %v987_v19 = vmul.f32 1.442695, %v905_v17 }
 0x2d0   :  { %v1686_v32 = vpop.eup %1685  ;;  %1697 = vpow2.f32 %v991_v18 }
 0x2d1   :  { %v1688_v20 = vpop.eup %1687  ;;  %1699 = vpow2.f32 %v987_v19  ;;  %v1605_v3 = vpop.f32.mrb[44].mxu0  ;;  %v1023_v25 = vsel %vm1963_vm3, %v1686_v32, %v2043_v42 }
 0x2d2   :  { %v1690_v21 = vpop.eup %1689  ;;  %v926_v22 = vadd.f32 %v1605_v3, %v1950_v8  ;;  %v917_v23 = vpop.f32.mrb[45].mxu0  ;;  %v1021_v26 = vsel %vm1963_vm3, %v1688_v20, %v2054_v48 }
 0x2d3   :  { %v1692_v24 = vpop.eup %1691  ;;  %v1024_v27 = vsel %vm1963_vm3, %v1690_v21, %v897_v53  ;;  %v918_v28 = vadd.f32 %v1950_v8, %v917_v23  ;;  %v1606_v29 = vpop.f32.mrb[46].mxu0 }
 0x2d4   :  { %v1372_v30 = vpack.c.bf16 %v1024_v27, %v1023_v25  ;;  %v1022_v31 = vsel %vm1963_vm3, %v1692_v24, %v889_v57  ;;  %v997_v33 = vmul.f32 1.442695, %v926_v22  ;;  %v929_v35 = vadd.f32 %v1606_v29, %v1950_v8  ;;  %v920_v36 = vpop.f32.mrb[47].mxu0 }
 0x2d5   :  { %v1367_v37 = vpack.c.bf16 %v1022_v31, %v1021_v26  ;;  %v993_v38 = vmul.f32 1.442695, %v918_v28  ;;  %v921_v39 = vadd.f32 %v1950_v8, %v920_v36 }
 0x2d6   :  { %1404 = vst [vmem:[%s2143_s7 + $0x58] sm:$0xff] %v1372_v30   ;;  %1701 = vpow2.f32 %v997_v33  ;;  %v999_v40 = vmul.f32 1.442695, %v929_v35 }
 0x2d7   :  { %1403 = vst [vmem:[%s2143_s7 + $0x50] sm:$0xff] %v1367_v37   ;;  %1703 = vpow2.f32 %v993_v38  ;;  %v995_v41 = vmul.f32 1.442695, %v921_v39 }
 0x2d8   :  { %v1694_v42 = vpop.eup %1693  ;;  %1705 = vpow2.f32 %v999_v40 }
 0x2d9   :  { %v1696_v43 = vpop.eup %1695  ;;  %1707 = vpow2.f32 %v995_v41  ;;  %v1027_v8 = vsel %vm1963_vm3, %v1694_v42, %v910_v1 }
 0x2da   :  { %v1698_v44 = vpop.eup %1697  ;;  %v1025_v47 = vsel %vm1963_vm3, %v1696_v43, %v902_v9 }
 0x2db   :  { %v1700_v45 = vpop.eup %1699  ;;  %v1028_v46 = vsel %vm1963_vm3, %v1698_v44, %v913_v13 }
 0x2dc   :  { %v1382_v48 = vpack.c.bf16 %v1028_v46, %v1027_v8  ;;  %v1026_v49 = vsel %vm1963_vm3, %v1700_v45, %v905_v17 }
 0x2dd   :  { %v1377_v50 = vpack.c.bf16 %v1026_v49, %v1025_v47 }
 0x2de   :  { %1406 = vst [vmem:[%s2143_s7 + $0x68] sm:$0xff] %v1382_v48  }
 0x2df   :  { %1405 = vst [vmem:[%s2143_s7 + $0x60] sm:$0xff] %v1377_v50  }
 0x2e0   :  { %v1702_v51 = vpop.eup %1701 }
 0x2e1   :  { %v1704_v52 = vpop.eup %1703  ;;  %v1031_v55 = vsel %vm1963_vm3, %v1702_v51, %v926_v22 }
 0x2e2   :  { %v1706_v53 = vpop.eup %1705  ;;  %v1029_v57 = vsel %vm1963_vm3, %v1704_v52, %v918_v28 }
 0x2e3   :  { %v1708_v54 = vpop.eup %1707  ;;  %v1032_v56 = vsel %vm1963_vm3, %v1706_v53, %v929_v35 }
 0x2e4   :  { %v1392_v58 = vpack.c.bf16 %v1032_v56, %v1031_v55  ;;  %v1030_v59 = vsel %vm1963_vm3, %v1708_v54, %v921_v39 }
 0x2e5   :  { %v1387_v60 = vpack.c.bf16 %v1030_v59, %v1029_v57 }
 0x2e6   :  { %1408 = vst [vmem:[%s2143_s7 + $0x78] sm:$0xff] %v1392_v58  }
 0x2e7   :  { %1407 = vst [vmem:[%s2143_s7 + $0x70] sm:$0xff] %v1387_v60  }

</bundles_post_ra>
